<compile_context>
chip_gen: v5e
topology: v5e:2x2
jax: 0.10.0
libtpu: 0.0.40
codegen_flags: <defaults>
</compile_context>

<pallas_src>
import jax
import jax.numpy as jnp
from jax.experimental import pallas as pl
from jax.experimental.pallas import tpu as pltpu


# ----------------------------- config -----------------------------
class Config:
    d_embed = 64
    d_ff = 128


# ----------------- fused FFN + residual + LayerNorm kernel -----------------
def _ffn_kernel(x_ref, w1_ref, w2_ref, g_ref, b_ref, o_ref):
    x = x_ref[...]                                                   # (tm, E) f32
    # Linear1 (no bias) -> Dropout(eval: identity) -> ReLU.
    # TODO(synk): training-mode Dropout(0.5) would need pltpu.prng_* masking;
    # the deployed eval forward is identity, which is what we implement.
    xc = x.astype(w1_ref.dtype)                 # no-op in f32 mode, cast in bf16 mode
    h = jnp.maximum(
        jnp.dot(xc, w1_ref[...], preferred_element_type=jnp.float32), 0.0)
    # Linear2 (no bias) + residual (residual stays f32)
    y = jnp.dot(h.astype(w2_ref.dtype), w2_ref[...],
                preferred_element_type=jnp.float32) + x
    # LayerNorm over last dim, one-pass statistics, eps=1e-5
    e = y.shape[-1]
    s1 = jnp.sum(y, axis=-1, keepdims=True)
    s2 = jnp.sum(y * y, axis=-1, keepdims=True)
    mu = s1 * (1.0 / e)
    var = s2 * (1.0 / e) - mu * mu
    o_ref[...] = (y - mu) * jax.lax.rsqrt(var + 1e-5) * g_ref[...] + b_ref[...]


def _round_up(a, b):
    return ((a + b - 1) // b) * b


def _pick_row_tile(M, block_rows):
    """Pick the row-tile size tm (and padded extent Mp)."""
    if M <= 1024:
        # Small problem: a single grid step (one kernel invocation) is cheapest
        # on v5e/v6e; megacore sharding would not pay off at this size anyway.
        return M, M
    # At least 2 grid steps so v7x megacore can shard row tiles across its TCs.
    tm = min(block_rows, _round_up(pl.cdiv(M, 2), 8))
    if M % tm == 0:
        return tm, M
    # Prefer a divisor of M (multiple of 8) to avoid wrapper pad + slice copies.
    if M % 8 == 0:
        best = 0
        for d in range(8, tm + 1, 8):
            if M % d == 0:
                best = d
        if best >= 256:
            return best, M
    # Fallback: padded tail (rare; only when M has no usable divisor).
    Mp = _round_up(M, tm)
    return tm, Mp


def poswise_ffn(x, w1, w2, gamma, beta, *, block_rows=4096, use_bf16_matmul=False):
    """x: (B, L, E) float32. Returns (B, L, E) float32."""
    B, L, E = x.shape
    dff = w1.shape[1]
    M = B * L
    x2 = x.reshape(M, E)

    tm, Mp = _pick_row_tile(M, block_rows)
    if Mp != M:
        x2 = jnp.pad(x2, ((0, Mp - M), (0, 0)))

    if use_bf16_matmul:
        # Native MXU dtype: ~3-4x matmul throughput + half the weight DMA.
        w1 = w1.astype(jnp.bfloat16)
        w2 = w2.astype(jnp.bfloat16)

    wbytes = (E * dff + dff * E) * w1.dtype.itemsize
    # Per-step VMEM footprint estimate: double-buffered in/out blocks, resident
    # weights (2 buffers each), and kernel temporaries (h, y, stats).
    vmem_est = (4 * tm * E * 4) + (2 * wbytes) + (3 * tm * dff * 4) + (3 * tm * E * 4)
    vmem_limit = min(max(vmem_est + (2 << 20), 32 << 20), 56 << 20)

    cost = pl.CostEstimate(
        flops=4 * Mp * E * dff,                 # two matmuls
        transcendentals=Mp,                      # one rsqrt per row
        bytes_accessed=2 * Mp * E * 4 + wbytes)

    out = pl.pallas_call(
        _ffn_kernel,
        out_shape=jax.ShapeDtypeStruct((Mp, E), jnp.float32),
        grid=(Mp // tm,),
        in_specs=[
            pl.BlockSpec((tm, E), lambda i: (i, 0)),     # x row tile
            pl.BlockSpec((E, dff), lambda i: (0, 0)),    # W1 (resident)
            pl.BlockSpec((dff, E), lambda i: (0, 0)),    # W2 (resident)
            pl.BlockSpec((1, E), lambda i: (0, 0)),      # LayerNorm gamma
            pl.BlockSpec((1, E), lambda i: (0, 0)),      # LayerNorm beta
        ],
        out_specs=pl.BlockSpec((tm, E), lambda i: (i, 0)),
        compiler_params=pltpu.CompilerParams(
            dimension_semantics=("parallel",),
            vmem_limit_bytes=vmem_limit),
        cost_estimate=cost,
    )(x2, w1, w2, gamma, beta)

    if Mp != M:
        out = out[:M]
    return out.reshape(B, L, E)


# --------------------------- parameters -----------------------------
def init_params(cfg, key):
    k1, k2 = jax.random.split(key)
    E, dff = cfg.d_embed, cfg.d_ff
    return dict(
        w1=jax.random.normal(k1, (E, dff), jnp.float32) * 0.05,
        w2=jax.random.normal(k2, (dff, E), jnp.float32) * 0.05,
        gamma=jnp.ones((1, E), jnp.float32),    # nn.LayerNorm default init
        beta=jnp.zeros((1, E), jnp.float32),
    )


# ------------------------- pure-JAX reference ------------------------
def _reference(params, x):
    h = jnp.maximum(x @ params["w1"], 0.0)
    y = h @ params["w2"] + x
    mu = jnp.mean(y, axis=-1, keepdims=True)
    var = jnp.mean((y - mu) ** 2, axis=-1, keepdims=True)
    return (y - mu) * jax.lax.rsqrt(var + 1e-5) * params["gamma"] + params["beta"]


# ------------------------------ main --------------------------------
if __name__ == "__main__":
    cfg = Config()
    key = jax.random.PRNGKey(0)
    kp, kx1, kx2 = jax.random.split(key, 3)
    params = init_params(cfg, kp)

    # 1) Small shape from the module spec (single grid step path).
    B, L = 2, 8
    x = jax.random.normal(kx1, (B, L, cfg.d_embed), jnp.float32)
    out = poswise_ffn(x, params["w1"], params["w2"],
                      params["gamma"], params["beta"])
    out = jax.block_until_ready(out)
    assert out.shape == (B, L, cfg.d_embed) and out.dtype == jnp.float32
    ref = _reference(params, x)
    assert jnp.allclose(out, ref, atol=1e-4, rtol=1e-4)

    # 2) Larger shape exercising the multi-tile (>=2 parallel grid steps) path.
    B2, L2 = 4, 512                       # M = 2048 -> two 1024-row tiles
    x2 = jax.random.normal(kx2, (B2, L2, cfg.d_embed), jnp.float32)
    out2 = jax.block_until_ready(
        poswise_ffn(x2, params["w1"], params["w2"],
                    params["gamma"], params["beta"]))
    ref2 = _reference(params, x2)
    assert jnp.allclose(out2, ref2, atol=1e-4, rtol=1e-4)

    # 3) Optional bf16-matmul fast path (looser tolerance by design).
    out3 = jax.block_until_ready(
        poswise_ffn(x2, params["w1"], params["w2"],
                    params["gamma"], params["beta"], use_bf16_matmul=True))
    assert jnp.allclose(out3, ref2, atol=1e-1, rtol=5e-2)

    print("KERNEL_OK")
</pallas_src>

<mosaic_0001>
module attributes {stable_mosaic.version = 11 : i64} {
  func.func @_ffn_kernel(%arg0: i32, %arg1: memref<16x64xf32, #tpu.memory_space<vmem>>, %arg2: memref<64x128xf32, #tpu.memory_space<vmem>>, %arg3: memref<128x64xf32, #tpu.memory_space<vmem>>, %arg4: memref<1x64xf32, #tpu.memory_space<vmem>>, %arg5: memref<1x64xf32, #tpu.memory_space<vmem>>, %arg6: memref<16x64xf32, #tpu.memory_space<vmem>>) attributes {dimension_semantics = [#tpu.dimension_semantics<parallel>], iteration_bounds = array<i64: 1>, scalar_prefetch = 0 : i64, scratch_operands = 0 : i64, tpu.core_type = #tpu.core_type<tc>, window_params = [{transform_indices = @transform_0, window_bounds = array<i64: 16, 64>}, {pipeline_mode = #tpu.pipeline_mode<synchronous>, transform_indices = @transform_1, window_bounds = array<i64: 64, 128>}, {pipeline_mode = #tpu.pipeline_mode<synchronous>, transform_indices = @transform_2, window_bounds = array<i64: 128, 64>}, {pipeline_mode = #tpu.pipeline_mode<synchronous>, transform_indices = @transform_3, window_bounds = array<i64: 1, 64>}, {pipeline_mode = #tpu.pipeline_mode<synchronous>, transform_indices = @transform_4, window_bounds = array<i64: 1, 64>}, {transform_indices = @transform_5, window_bounds = array<i64: 16, 64>}]} {
    %c0 = arith.constant 0 : index
    %c0_0 = arith.constant 0 : index
    %0 = vector.load %arg1[%c0, %c0_0] : memref<16x64xf32, #tpu.memory_space<vmem>>, vector<16x64xf32>
    %c0_1 = arith.constant 0 : index
    %c0_2 = arith.constant 0 : index
    %1 = vector.load %arg2[%c0_1, %c0_2] : memref<64x128xf32, #tpu.memory_space<vmem>>, vector<64x128xf32>
    %cst = arith.constant dense<0.000000e+00> : vector<16x128xf32>
    %2 = tpu.matmul %0, %1, %cst {dimension_numbers = #tpu.dot_dimension_numbers<[1], [0], [0], [1], [0, 0, 1, 1], [], []>} : vector<16x64xf32>, vector<64x128xf32>, vector<16x128xf32> -> vector<16x128xf32>
    %cst_3 = arith.constant 0.000000e+00 : f32
    %3 = vector.broadcast %cst_3 : f32 to vector<16x128xf32>
    %4 = arith.maximumf %2, %3 : vector<16x128xf32>
    %c0_4 = arith.constant 0 : index
    %c0_5 = arith.constant 0 : index
    %5 = vector.load %arg3[%c0_4, %c0_5] : memref<128x64xf32, #tpu.memory_space<vmem>>, vector<128x64xf32>
    %cst_6 = arith.constant dense<0.000000e+00> : vector<16x64xf32>
    %6 = tpu.matmul %4, %5, %cst_6 {dimension_numbers = #tpu.dot_dimension_numbers<[1], [0], [0], [1], [0, 0, 1, 1], [], []>} : vector<16x128xf32>, vector<128x64xf32>, vector<16x64xf32> -> vector<16x64xf32>
    %7 = arith.addf %6, %0 : vector<16x64xf32>
    %cst_7 = arith.constant dense<0.000000e+00> : vector<16xf32>
    %8 = vector.multi_reduction <add>, %7, %cst_7 [1] : vector<16x64xf32> to vector<16xf32>
    %9 = vector.shape_cast %8 : vector<16xf32> to vector<16x1xf32>
    %10 = arith.mulf %7, %7 : vector<16x64xf32>
    %cst_8 = arith.constant dense<0.000000e+00> : vector<16xf32>
    %11 = vector.multi_reduction <add>, %10, %cst_8 [1] : vector<16x64xf32> to vector<16xf32>
    %12 = vector.shape_cast %11 : vector<16xf32> to vector<16x1xf32>
    %cst_9 = arith.constant 1.562500e-02 : f32
    %13 = vector.broadcast %cst_9 : f32 to vector<16x1xf32>
    %14 = arith.mulf %9, %13 : vector<16x1xf32>
    %cst_10 = arith.constant 1.562500e-02 : f32
    %15 = vector.broadcast %cst_10 : f32 to vector<16x1xf32>
    %16 = arith.mulf %12, %15 : vector<16x1xf32>
    %17 = arith.mulf %14, %14 : vector<16x1xf32>
    %18 = arith.subf %16, %17 : vector<16x1xf32>
    %19 = vector.broadcast %14 : vector<16x1xf32> to vector<16x64xf32>
    %20 = arith.subf %7, %19 : vector<16x64xf32>
    %cst_11 = arith.constant 9.99999974E-6 : f32
    %21 = vector.broadcast %cst_11 : f32 to vector<16x1xf32>
    %22 = arith.addf %18, %21 : vector<16x1xf32>
    %23 = math.rsqrt %22 : vector<16x1xf32>
    %24 = vector.broadcast %23 : vector<16x1xf32> to vector<16x64xf32>
    %25 = arith.mulf %20, %24 : vector<16x64xf32>
    %c0_12 = arith.constant 0 : index
    %c0_13 = arith.constant 0 : index
    %26 = vector.load %arg4[%c0_12, %c0_13] : memref<1x64xf32, #tpu.memory_space<vmem>>, vector<1x64xf32>
    %27 = vector.broadcast %26 : vector<1x64xf32> to vector<16x64xf32>
    %28 = arith.mulf %25, %27 : vector<16x64xf32>
    %c0_14 = arith.constant 0 : index
    %c0_15 = arith.constant 0 : index
    %29 = vector.load %arg5[%c0_14, %c0_15] : memref<1x64xf32, #tpu.memory_space<vmem>>, vector<1x64xf32>
    %30 = vector.broadcast %29 : vector<1x64xf32> to vector<16x64xf32>
    %31 = arith.addf %28, %30 : vector<16x64xf32>
    %c0_16 = arith.constant 0 : index
    %c0_17 = arith.constant 0 : index
    %32 = vector.load %arg6[%c0_16, %c0_17] : memref<16x64xf32, #tpu.memory_space<vmem>>, vector<16x64xf32>
    tpu.vector_store %arg6[%c0_16, %c0_17], %31 {strides = array<i32>} : memref<16x64xf32, #tpu.memory_space<vmem>>, vector<16x64xf32>,
    return
  }
  func.func @transform_0(%arg0: i32) -> (i32, i32) {
    %c0_i32 = arith.constant 0 : i32
    %c0_i32_0 = arith.constant 0 : i32
    return %arg0, %c0_i32 : i32, i32
  }
  func.func @transform_1(%arg0: i32) -> (i32, i32) {
    %c0_i32 = arith.constant 0 : i32
    %c0_i32_0 = arith.constant 0 : i32
    %c0_i32_1 = arith.constant 0 : i32
    return %c0_i32, %c0_i32_0 : i32, i32
  }
  func.func @transform_2(%arg0: i32) -> (i32, i32) {
    %c0_i32 = arith.constant 0 : i32
    %c0_i32_0 = arith.constant 0 : i32
    %c0_i32_1 = arith.constant 0 : i32
    return %c0_i32, %c0_i32_0 : i32, i32
  }
  func.func @transform_3(%arg0: i32) -> (i32, i32) {
    %c0_i32 = arith.constant 0 : i32
    %c0_i32_0 = arith.constant 0 : i32
    %c0_i32_1 = arith.constant 0 : i32
    return %c0_i32, %c0_i32_0 : i32, i32
  }
  func.func @transform_4(%arg0: i32) -> (i32, i32) {
    %c0_i32 = arith.constant 0 : i32
    %c0_i32_0 = arith.constant 0 : i32
    %c0_i32_1 = arith.constant 0 : i32
    return %c0_i32, %c0_i32_0 : i32, i32
  }
  func.func @transform_5(%arg0: i32) -> (i32, i32) {
    %c0_i32 = arith.constant 0 : i32
    %c0_i32_0 = arith.constant 0 : i32
    return %arg0, %c0_i32 : i32, i32
  }
}

</mosaic_0001>

<bundles_post_ra>
// kernel: tpu_custom_call.1
= control target key start
LH: loop header
LB: loop body
LE: loop exit
PB: predicated region body
PF: predicated region fallthrough
CT: control target
= control target key end

     0   :  { %s363_s0 = inlined_call_operand.vmem [shape: f32[16,64], index: 0, kind: input, shape index: {}]   ;;  %s364_s1 = inlined_call_operand.vmem [shape: f32[64,128], index: 1, kind: input, shape index: {}]   ;;  %s365_s2 = inlined_call_operand.vmem [shape: f32[128,64], index: 2, kind: input, shape index: {}]   ;;  %s366_s3 = inlined_call_operand.vmem [shape: f32[1,64], index: 3, kind: input, shape index: {}]   ;;  %s367_s4 = inlined_call_operand.vmem [shape: f32[1,64], index: 4, kind: input, shape index: {}]   ;;  %s368_s5 = inlined_call_operand.hbm [shape: f32[16,64], index: 5, kind: output, shape index: {}]  }
   0x1   :  { %v30_v0 = vld [vmem:[%s364_s1 + $0x38] sm:$0xff]  ;;  %v29_v1 = vld [vmem:[%s364_s1 + $0x30] sm:$0xff]  ;;  %v28_v2 = vld [vmem:[%s364_s1 + $0x28] sm:$0xff] }
   0x2   :  { %46 = vmatpush.msra.mxu0 %v30_v0  ;;  %v78_v3 = vld [vmem:[%s365_s2 + $0x78] sm:$0xff]  ;;  %v77_v4 = vld [vmem:[%s365_s2 + $0x70] sm:$0xff]  ;;  %v27_v5 = vld [vmem:[%s364_s1 + $0x20] sm:$0xff] }
   0x3   :  { %79 = vmatpush.msra.mxu1 %v78_v3  ;;  %184 = vmatpush.msra.mxu2 %v78_v3  ;;  %v76_v6 = vld [vmem:[%s365_s2 + $0x68] sm:$0xff]  ;;  %v26_v7 = vld [vmem:[%s364_s1 + $0x18] sm:$0xff]  ;;  %v25_v8 = vld [vmem:[%s364_s1 + $0x10] sm:$0xff] }
   0x4   :  { %47 = vmatpush.msra.mxu0 %v29_v1  ;;  %v75_v9 = vld [vmem:[%s365_s2 + $0x60] sm:$0xff] }
   0x5   :  { %80 = vmatpush.msra.mxu1 %v77_v4  ;;  %185 = vmatpush.msra.mxu2 %v77_v4 }
   0x6   :  { %48 = vmatpush.msra.mxu0 %v28_v2 }
   0x7   :  { %81 = vmatpush.msra.mxu1 %v76_v6  ;;  %186 = vmatpush.msra.mxu2 %v76_v6 }
   0x8   :  { %49 = vmatpush.msra.mxu0 %v27_v5 }
   0x9   :  { %10 = vsyncpa [#allocation3], 0  ;;  %v74_v10 = vld [vmem:[%s365_s2 + $0x58] sm:$0xff]  ;;  %v24_v11 = vld [vmem:[%s364_s1 + $0x8] sm:$0xff]  ;;  %82 = vmatpush.msra.mxu1 %v75_v9  ;;  %187 = vmatpush.msra.mxu2 %v75_v9  ;;  %vm31_vm0 = vcmask 523264   ;;  %s170_s23 = sshll.u32 %s368_s5, 4  ;;  %s171_s23 = int_to_ptr.hbm [resolvable:$true] %s170_s23 }
   0xa   :  { %50 = vmatpush.msra.mxu0 %v26_v7  ;;  %v73_v12 = vld [vmem:[%s365_s2 + $0x50] sm:$0xff]  ;;  %v23_v13 = vld [vmem:[%s364_s1] sm:$0xff]  ;;  %v72_v15 = vld [vmem:[%s365_s2 + $0x48] sm:$0xff]  ;;  %s236_s24 = smov 128   ;;  %s237_s25 = smov 8  }
   0xb   :  { %83 = vmatpush.msra.mxu1 %v74_v10  ;;  %188 = vmatpush.msra.mxu2 %v74_v10  ;;  %v21_v14 = vld [vmem:[%s363_s0] sm:$0xff]  ;;  %v70_v17 = vld [vmem:[%s365_s2 + $0x38] sm:$0xff]  ;;  %v69_v18 = vld [vmem:[%s365_s2 + $0x30] sm:$0xff] }
   0xc   :  { %51 = vmatpush.msra.mxu0 %v25_v8  ;;  %v71_v16 = vld [vmem:[%s365_s2 + $0x40] sm:$0xff]  ;;  %v22_v19 = vld [vmem:[%s363_s0 + $0x8] sm:$0xff]  ;;  %v66_v22 = vld [vmem:[%s365_s2 + $0x18] sm:$0xff] }
   0xd   :  { %84 = vmatpush.msra.mxu1 %v73_v12  ;;  %189 = vmatpush.msra.mxu2 %v73_v12  ;;  %v68_v20 = vld [vmem:[%s365_s2 + $0x28] sm:$0xff]  ;;  %v67_v21 = vld [vmem:[%s365_s2 + $0x20] sm:$0xff]  ;;  %v65_v23 = vld [vmem:[%s365_s2 + $0x10] sm:$0xff] }
   0xe   :  { %52 = vmatpush.msra.mxu0 %v24_v11  ;;  %v64_v24 = vld [vmem:[%s365_s2 + $0x8] sm:$0xff]  ;;  %v63_v25 = vld [vmem:[%s365_s2] sm:$0xff] }
   0xf   :  { %85 = vmatpush.msra.mxu1 %v72_v15  ;;  %190 = vmatpush.msra.mxu2 %v72_v15  ;;  %v203_v61 = vld [vmem:[%s366_s3] ss:$0 sm:$0xff]  ;;  %s235_s3 = smov [#allocation2]  }
  0x10   :  { %53 = vmatpush.msra.mxu0 %v23_v13  ;;  %v204_v0 = vld [vmem:[%s367_s4] ss:$0 sm:$0xff]  ;;  %s168_s21 = sshll.u32 %s235_s3, 4  ;;  %s169_s21 = int_to_ptr.vmem [resolvable:$true] %s168_s21 }
  0x11   :  { %182 = vmatmul.msk.f32.vlgmr.msra.gmra.mxu0 %vm31_vm0, %v21_v14  ;;  %86 = vmatpush.msra.mxu1 %v71_v16 }
  0x12   :  { %191 = vmatpush.msra.mxu2 %v71_v16 }
  0x13   :  { %87 = vmatpush.msra.mxu1 %v70_v17 }
  0x14   :  { %192 = vmatpush.msra.mxu2 %v70_v17 }
  0x15   :  { %88 = vmatpush.msra.mxu1 %v69_v18 }
  0x16   :  { %193 = vmatpush.msra.mxu2 %v69_v18 }
  0x17   :  { %89 = vmatpush.msra.mxu1 %v68_v20 }
  0x18   :  { %194 = vmatpush.msra.mxu2 %v68_v20 }
  0x19   :  { %183 = vmatmul.msk.f32.gmra.mxu0 %vm31_vm0, %v22_v19  ;;  %90 = vmatpush.msra.mxu1 %v67_v21 }
  0x1a   :  { %195 = vmatpush.msra.mxu2 %v67_v21 }
  0x1b   :  { %91 = vmatpush.msra.mxu1 %v66_v22 }
  0x1c   :  { %196 = vmatpush.msra.mxu2 %v66_v22 }
  0x1d   :  { %92 = vmatpush.msra.mxu1 %v65_v23 }
  0x1e   :  { %197 = vmatpush.msra.mxu2 %v65_v23 }
  0x1f   :  { %93 = vmatpush.msra.mxu1 %v64_v24 }
  0x20   :  { %198 = vmatpush.msra.mxu2 %v64_v24 }
  0x21   :  { %94 = vmatpush.msra.mxu1 %v63_v25 }
  0x22   :  { %199 = vmatpush.msra.mxu2 %v63_v25 }
  0x8e   :  { %v55_v26 = vpop.f32.mrf.mxu0 }
  0x8f   :  { %v61_v27 = vmax.f32 %v55_v26, 0.0 }
  0x91   :  { %95 = vmatmul.f32.vlgmr.msra.gmra.mxu1 %v61_v27 }
  0x96   :  { %v58_v28 = vpop.f32.mrf.mxu0 }
  0x97   :  { %v62_v29 = vmax.f32 %v58_v28, 0.0 }
  0x99   :  { %98 = vmatmul.f32.vlgmr.msra.gmra.mxu2 %v62_v29 }
 0x10e   :  { %v96_v30 = vpop.f32.mrf.mxu1 }
 0x10f   :  { %v97_v31 = vadd.f32 %v96_v30, %v21_v14 }
 0x111   :  { %v102_v32 = vsel %vm31_vm0, %v97_v31, 0.0  ;;  %v108_v33 = vmul.f32 %v97_v31, %v97_v31 }
 0x112   :  { %103 = vadd.xlane.f32.xlu0 %v102_v32 }
 0x113   :  { %v110_v34 = vsel %vm31_vm0, %v108_v33, 0.0 }
 0x114   :  { %111 = vadd.xlane.f32.xlu1 %v110_v34 }
 0x11c   :  { %v99_v35 = vpop.f32.mrf.mxu2 }
 0x11d   :  { %v100_v36 = vadd.f32 %v99_v35, %v22_v19 }
 0x11f   :  { %v105_v37 = vsel %vm31_vm0, %v100_v36, 0.0  ;;  %v109_v38 = vmul.f32 %v100_v36, %v100_v36 }
 0x120   :  { %106 = vadd.xlane.f32.xlu0 %v105_v37 }
 0x121   :  { %v113_v39 = vsel %vm31_vm0, %v109_v38, 0.0 }
 0x122   :  { %114 = vadd.xlane.f32.xlu1 %v113_v39 }
 0x185   :  { %v104_v40 = vpop.xlane.xlu0 %103 }
 0x186   :  { %v116_v41 = vmul.f32 0.015625, %v104_v40 }
 0x187   :  { %v112_v42 = vpop.xlane.xlu1 %111 }
 0x188   :  { %v120_v43 = vmul.f32 %v116_v41, %v116_v41  ;;  %v118_v44 = vmul.f32 0.015625, %v112_v42  ;;  %v124_v60 = vsub.f32 %v97_v31, %v116_v41 }
 0x18a   :  { %v122_v45 = vsub.f32 %v118_v44, %v120_v43 }
 0x18c   :  { %v126_v46 = vadd.f32 1e-05, %v122_v45 }
 0x18e   :  { %205 = vrsqrt.f32 %v126_v46  ;;  %vm134_vm2 = vweird.f32 %v126_v46 }
 0x193   :  { %v107_v47 = vpop.xlane.xlu0 %106 }
 0x194   :  { %v206_v48 = vpop.eup %205  ;;  %v117_v49 = vmul.f32 0.015625, %v107_v47 }
 0x195   :  { %v129_v50 = vmul.f32 %v206_v48, %v126_v46  ;;  %v115_v51 = vpop.xlane.xlu1 %114  ;;  %vm135_vm1 = vweird.f32 %v206_v48 }
 0x196   :  { %v121_v52 = vmul.f32 %v117_v49, %v117_v49  ;;  %v119_v53 = vmul.f32 0.015625, %v115_v51  ;;  %vm136_vm3 = vmor %vm134_vm2, %vm135_vm1  ;;  %v125_v9 = vsub.f32 %v100_v36, %v117_v49 }
 0x197   :  { %v130_v54 = vmul.f32 %v206_v48, %v129_v50 }
 0x198   :  { %v123_v55 = vsub.f32 %v119_v53, %v121_v52 }
 0x199   :  { %v131_v56 = vmul.f32 0.5, %v130_v54 }
 0x19a   :  { %v127_v57 = vadd.f32 1e-05, %v123_v55 }
 0x19b   :  { %v132_v58 = vsub.f32 1.5, %v131_v56 }
 0x19c   :  { %207 = vrsqrt.f32 %v127_v57  ;;  %vm144_vm5 = vweird.f32 %v127_v57 }
 0x19d   :  { %v133_v59 = vmul.f32 %v206_v48, %v132_v58 }
 0x19f   :  { %v137_v62 = vsel %vm136_vm3, %v206_v48, %v133_v59 }
 0x1a0   :  { %v148_v63 = vmul.f32 %v137_v62, %v124_v60 }
 0x1a2   :  { %v208_v1 = vpop.eup %207  ;;  %v154_v2 = vmul.f32 %v203_v61, %v148_v63 }
 0x1a3   :  { %v139_v3 = vmul.f32 %v208_v1, %v127_v57  ;;  %vm145_vm4 = vweird.f32 %v208_v1 }
 0x1a4   :  { %v160_v4 = vadd.f32 %v204_v0, %v154_v2  ;;  %vm146_vm6 = vmor %vm144_vm5, %vm145_vm4 }
 0x1a5   :  { %v140_v5 = vmul.f32 %v208_v1, %v139_v3 }
 0x1a6   :  { %162 = vst.msk [vmem:[#allocation2] sm:$0xff] %vm31_vm0, %v160_v4 }
 0x1a7   :  { %v141_v6 = vmul.f32 0.5, %v140_v5 }
 0x1a9   :  { %v142_v7 = vsub.f32 1.5, %v141_v6 }
 0x1ab   :  { %v143_v8 = vmul.f32 %v208_v1, %v142_v7 }
 0x1ad   :  { %v147_v10 = vsel %vm146_vm6, %v208_v1, %v143_v8 }
 0x1ae   :  { %v149_v11 = vmul.f32 %v147_v10, %v125_v9 }
 0x1b0   :  { %v155_v12 = vmul.f32 %v203_v61, %v149_v11 }
 0x1b2   :  { %v161_v13 = vadd.f32 %v204_v0, %v155_v12 }
 0x1b4   :  { %163 = vst.msk [vmem:[#allocation2 + $0x8] sm:$0xff] %vm31_vm0, %v161_v13 }
 0x1b5   :  { %176 = dma.vmem_to_hbm [thread:$0]  %s169_s21, 256, %s171_s23, [#allocation3], %s236_s24, %s236_s24, %s237_s25  }
 0x1b6   :  { %233 = dma.done.wait [#allocation3], 256  }
 0x1b7   :  { %234 = vsyncadd [#allocation3], 4294967040 }
 0x1b8   :  { %181 = vsyncpa [#allocation3], 1 }

</bundles_post_ra>
